<compile_context>
chip_gen: v7x
topology: tpu7x:2x2x1
jax: 0.10.0
libtpu: 0.0.40
codegen_flags: <defaults>
</compile_context>

<pallas_src>
import jax
import jax.numpy as jnp
from jax.experimental import pallas as pl
from jax.experimental.pallas import tpu as pltpu


def _round_up(x, m):
    return (x + m - 1) // m * m


def _legalize_tile(t):
    """Round a requested tile down to a 256-multiple (MXU cadence), min 128."""
    if t >= 256:
        return (t // 256) * 256
    return 128


# ---------------- Fused kernel: out = adj @ (x @ W) + bias -----------------------
# Grid: (row tiles of adj/out, k tiles over adj columns == x rows).  The output
# block index_map ignores k, so o_ref (f32) is resident across the reduction and
# is used directly as the accumulator (no scratch).

def _fused_gcn_kernel(adj_ref, x_ref, w_ref, b_ref, o_ref):
    k = pl.program_id(1)

    @pl.when(k == 0)
    def _():
        o_ref[...] = jnp.zeros_like(o_ref)

    # Support tile recomputed on the fly; the adj stream is HBM-bound so this
    # extra matmul rides in free MXU slack.
    s = jnp.dot(x_ref[...], w_ref[...],
                preferred_element_type=jnp.float32).astype(jnp.bfloat16)
    o_ref[...] += jnp.dot(adj_ref[...], s, preferred_element_type=jnp.float32)

    @pl.when(k == pl.num_programs(1) - 1)
    def _():
        o_ref[...] += b_ref[...]


# ---------------- Fallback (large f_in): two kernels ------------------------------

def _support_kernel(x_ref, w_ref, s_ref):
    s_ref[...] = jnp.dot(x_ref[...], w_ref[...],
                         preferred_element_type=jnp.float32).astype(s_ref.dtype)


def _adj_spmm_kernel(adj_ref, s_ref, b_ref, o_ref):
    k = pl.program_id(1)

    @pl.when(k == 0)
    def _():
        o_ref[...] = jnp.zeros_like(o_ref)

    o_ref[...] += jnp.dot(adj_ref[...], s_ref[...],
                          preferred_element_type=jnp.float32)

    @pl.when(k == pl.num_programs(1) - 1)
    def _():
        o_ref[...] += b_ref[...]


# ---------------- Wrapper ----------------------------------------------------------

def make_gcn_perturb(adj, weight, bias=None, *, tm=1024, tk=1024):
    """Build a forward(x) closure.  adj/weight/bias are padded + cast to bf16 ONCE
    here (static graph / parameters), so repeated forward calls do not pay the
    cast/pad HBM traffic again."""
    n = adj.shape[0]
    f_in, f_out = weight.shape
    assert adj.shape == (n, n)

    f_pad = _round_up(f_out, 128)          # lane-dense output features
    f_in_pad = _round_up(f_in, 128)        # contraction dim of x @ W

    n128 = _round_up(n, 128)
    # Guarantee >=2 programs on the parallel row axis when possible (v7x: 2 TCs).
    if n128 >= 256:
        tm = min(tm, _round_up(n128 // 2, 128))
    tm = _legalize_tile(min(tm, n128))
    tk = _legalize_tile(min(tk, n128))
    assert tm % 128 == 0 and tk % 128 == 0

    n_pad_m = _round_up(n, tm)             # padded adj rows / out rows
    n_pad_k = _round_up(n, tk)             # padded adj cols / x rows

    cdt = jnp.bfloat16                     # compute dtype (halves adj HBM bytes)

    # --- one-time pad + cast (padded regions are explicitly zero: required for
    # --- the k-reduction over padded tiles to be correct) ------------------------
    adj_p = jnp.zeros((n_pad_m, n_pad_k), cdt).at[:n, :n].set(adj.astype(cdt))
    w_p = jnp.zeros((f_in_pad, f_pad), cdt).at[:f_in, :f_out].set(weight.astype(cdt))
    if bias is None:
        b_p = jnp.zeros((1, f_pad), jnp.float32)
    else:
        b_p = jnp.zeros((1, f_pad), jnp.float32).at[0, :f_out].set(
            bias.astype(jnp.float32))

    # Fuse x@W into the adj spmm when the per-tile x block is cheap (common GCN
    # case: small f_in).  Otherwise compute support once in a separate kernel.
    fuse = f_in_pad <= max(512, 4 * f_pad)

    grid = (n_pad_m // tm, n_pad_k // tk)

    # --- VMEM budget from the real double-buffered footprint ---------------------
    if fuse:
        vmem_bytes = (2 * tm * tk * 2              # adj tiles (bf16, double-buffered)
                      + 2 * tk * f_in_pad * 2      # x tiles
                      + 2 * f_in_pad * f_pad * 2   # weight
                      + 2 * tm * f_pad * 4         # f32 output / accumulator
                      + 2 * f_pad * 4)             # bias
    else:
        vmem_bytes = max(
            2 * tk * f_in_pad * 2 + 2 * f_in_pad * f_pad * 2 + 2 * tk * f_pad * 2,
            2 * tm * tk * 2 + 2 * tk * f_pad * 2 + 2 * tm * f_pad * 4 + 2 * f_pad * 4)
    assert vmem_bytes <= 48 * 1024 * 1024, "tiles too large for v7x VMEM"
    vmem_limit = int(min(48 * 1024 * 1024,
                         max(16 * 1024 * 1024, vmem_bytes + 8 * 1024 * 1024)))

    cparams = pltpu.CompilerParams(
        dimension_semantics=("parallel", "arbitrary"),
        vmem_limit_bytes=vmem_limit,
    )

    if fuse:
        fused_call = pl.pallas_call(
            _fused_gcn_kernel,
            out_shape=jax.ShapeDtypeStruct((n_pad_m, f_pad), jnp.float32),
            grid=grid,
            in_specs=[
                pl.BlockSpec((tm, tk), lambda i, k: (i, k)),          # adj tile
                pl.BlockSpec((tk, f_in_pad), lambda i, k: (k, 0)),    # x tile
                pl.BlockSpec((f_in_pad, f_pad), lambda i, k: (0, 0)),  # weight
                pl.BlockSpec((1, f_pad), lambda i, k: (0, 0)),        # bias
            ],
            out_specs=pl.BlockSpec((tm, f_pad), lambda i, k: (i, 0)),
            compiler_params=cparams,
            cost_estimate=pl.CostEstimate(
                flops=2 * n_pad_m * n_pad_k * f_pad
                      + 2 * grid[0] * n_pad_k * f_in_pad * f_pad,
                transcendentals=0,
                bytes_accessed=(adj_p.size * 2
                                + grid[0] * n_pad_k * f_in_pad * 2
                                + f_in_pad * f_pad * 2
                                + n_pad_m * f_pad * 4
                                + f_pad * 4),
            ),
        )

        def forward(x):
            assert x.shape == (n, f_in)
            x_p = jnp.zeros((n_pad_k, f_in_pad), cdt).at[:n, :f_in].set(x.astype(cdt))
            out_p = fused_call(adj_p, x_p, w_p, b_p)
            return out_p[:n, :f_out]

        return forward

    # ---- non-fused fallback (large f_in): support computed once, then spmm ------
    support_call = pl.pallas_call(
        _support_kernel,
        out_shape=jax.ShapeDtypeStruct((n_pad_k, f_pad), cdt),
        grid=(n_pad_k // tk,),
        in_specs=[
            pl.BlockSpec((tk, f_in_pad), lambda r: (r, 0)),
            pl.BlockSpec((f_in_pad, f_pad), lambda r: (0, 0)),
        ],
        out_specs=pl.BlockSpec((tk, f_pad), lambda r: (r, 0)),
        compiler_params=pltpu.CompilerParams(
            dimension_semantics=("parallel",),
            vmem_limit_bytes=vmem_limit,
        ),
        cost_estimate=pl.CostEstimate(
            flops=2 * n_pad_k * f_in_pad * f_pad,
            transcendentals=0,
            bytes_accessed=(n_pad_k * f_in_pad * 2 + f_in_pad * f_pad * 2
                            + n_pad_k * f_pad * 2),
        ),
    )

    spmm_call = pl.pallas_call(
        _adj_spmm_kernel,
        out_shape=jax.ShapeDtypeStruct((n_pad_m, f_pad), jnp.float32),
        grid=grid,
        in_specs=[
            pl.BlockSpec((tm, tk), lambda i, k: (i, k)),       # adj tile
            pl.BlockSpec((tk, f_pad), lambda i, k: (k, 0)),    # support tile
            pl.BlockSpec((1, f_pad), lambda i, k: (0, 0)),     # bias
        ],
        out_specs=pl.BlockSpec((tm, f_pad), lambda i, k: (i, 0)),
        compiler_params=cparams,
        cost_estimate=pl.CostEstimate(
            flops=2 * n_pad_m * n_pad_k * f_pad,
            transcendentals=0,
            bytes_accessed=(adj_p.size * 2
                            + grid[0] * n_pad_k * f_pad * 2
                            + n_pad_m * f_pad * 4
                            + f_pad * 4),
        ),
    )

    def forward(x):
        assert x.shape == (n, f_in)
        x_p = jnp.zeros((n_pad_k, f_in_pad), cdt).at[:n, :f_in].set(x.astype(cdt))
        support = support_call(x_p, w_p)
        out_p = spmm_call(adj_p, support, b_p)
        return out_p[:n, :f_out]

    return forward


def gcn_perturb_forward(x, adj, weight, bias=None, *, tm=1024, tk=1024):
    """One-shot convenience wrapper (pays the adj cast once; prefer make_gcn_perturb
    + repeated forward(x) calls when the graph is reused)."""
    return make_gcn_perturb(adj, weight, bias, tm=tm, tk=tk)(x)


if __name__ == "__main__":
    # Small, deterministic synthetic shapes (toy; real wins show up at large N).
    N = 64        # number of graph nodes
    F_IN = 32     # in_features
    F_OUT = 16    # out_features

    key = jax.random.PRNGKey(0)
    k_x, k_adj, k_w, k_b = jax.random.split(key, 4)

    x = jax.random.normal(k_x, (N, F_IN), dtype=jnp.float32)

    # Dense "sparse" adjacency (torch.spmm on this == dense matmul): random
    # symmetric 0/1 mask with self-loops, row-normalized.
    raw = jax.random.uniform(k_adj, (N, N))
    mask = (raw < 0.1).astype(jnp.float32)
    adj = jnp.maximum(mask, mask.T) + jnp.eye(N, dtype=jnp.float32)
    adj = adj / jnp.sum(adj, axis=1, keepdims=True)

    # Deterministic parameter init (module's __init__ leaves them uninitialized).
    weight = jax.random.normal(k_w, (F_IN, F_OUT), dtype=jnp.float32) * 0.1
    bias = jax.random.normal(k_b, (F_OUT,), dtype=jnp.float32) * 0.1

    # --- fused path (small f_in) -------------------------------------------------
    forward = make_gcn_perturb(adj, weight, bias)
    out = jax.block_until_ready(forward(x))

    ref = adj @ (x @ weight) + bias
    assert out.shape == (N, F_OUT)
    assert jnp.allclose(out, ref, atol=2e-2, rtol=2e-2), (
        float(jnp.max(jnp.abs(out - ref))))

    # Second call reuses the cached padded bf16 adjacency / parameters.
    out2 = jax.block_until_ready(forward(x))
    assert jnp.allclose(out2, ref, atol=2e-2, rtol=2e-2)

    # --- non-fused fallback path (large f_in) ------------------------------------
    F_IN2 = 640
    k_x2, k_w2 = jax.random.split(jax.random.PRNGKey(1), 2)
    x2 = jax.random.normal(k_x2, (N, F_IN2), dtype=jnp.float32)
    weight2 = jax.random.normal(k_w2, (F_IN2, F_OUT), dtype=jnp.float32) * 0.1
    out3 = jax.block_until_ready(gcn_perturb_forward(x2, adj, weight2, None))
    ref3 = adj @ (x2 @ weight2)
    assert out3.shape == (N, F_OUT)
    assert jnp.allclose(out3, ref3, atol=5e-2, rtol=5e-2), (
        float(jnp.max(jnp.abs(out3 - ref3))))

    print("KERNEL_OK")
</pallas_src>

<mosaic_0001>
module attributes {stable_mosaic.version = 11 : i64} {
  func.func @_fused_gcn_kernel(%arg0: i32, %arg1: i32, %arg2: memref<128x128xbf16, #tpu.memory_space<vmem>>, %arg3: memref<128x128xbf16, #tpu.memory_space<vmem>>, %arg4: memref<128x128xbf16, #tpu.memory_space<vmem>>, %arg5: memref<1x128xf32, #tpu.memory_space<vmem>>, %arg6: memref<128x128xf32, #tpu.memory_space<vmem>>) attributes {dimension_semantics = [#tpu.dimension_semantics<parallel>, #tpu.dimension_semantics<arbitrary>], iteration_bounds = array<i64: 1, 1>, scalar_prefetch = 0 : i64, scratch_operands = 0 : i64, tpu.core_type = #tpu.core_type<tc>, window_params = [{transform_indices = @transform_0, window_bounds = array<i64: 128, 128>}, {transform_indices = @transform_1, window_bounds = array<i64: 128, 128>}, {pipeline_mode = #tpu.pipeline_mode<synchronous>, transform_indices = @transform_2, window_bounds = array<i64: 128, 128>}, {pipeline_mode = #tpu.pipeline_mode<synchronous>, transform_indices = @transform_3, window_bounds = array<i64: 1, 128>}, {transform_indices = @transform_4, window_bounds = array<i64: 128, 128>}]} {
    %c0_i32 = arith.constant 0 : i32
    %0 = arith.cmpi eq, %arg1, %c0_i32 : i32
    %1 = arith.extui %0 : i1 to i32
    %c0_i32_0 = arith.constant 0 : i32
    %2 = arith.cmpi ne, %1, %c0_i32_0 : i32
    scf.if %2 {
      %cst_13 = arith.constant 0.000000e+00 : f32
      %15 = vector.broadcast %cst_13 : f32 to vector<128x128xf32>
      %c0_14 = arith.constant 0 : index
      %c0_15 = arith.constant 0 : index
      %16 = vector.load %arg6[%c0_14, %c0_15] : memref<128x128xf32, #tpu.memory_space<vmem>>, vector<128x128xf32>
      tpu.vector_store %arg6[%c0_14, %c0_15], %15 {strides = array<i32>} : memref<128x128xf32, #tpu.memory_space<vmem>>, vector<128x128xf32>,
    } else {
    }
    %c0 = arith.constant 0 : index
    %c0_1 = arith.constant 0 : index
    %3 = vector.load %arg3[%c0, %c0_1] : memref<128x128xbf16, #tpu.memory_space<vmem>>, vector<128x128xbf16>
    %c0_2 = arith.constant 0 : index
    %c0_3 = arith.constant 0 : index
    %4 = vector.load %arg4[%c0_2, %c0_3] : memref<128x128xbf16, #tpu.memory_space<vmem>>, vector<128x128xbf16>
    %cst = arith.constant dense<0.000000e+00> : vector<128x128xf32>
    %5 = tpu.matmul %3, %4, %cst {dimension_numbers = #tpu.dot_dimension_numbers<[1], [0], [0], [1], [0, 0, 1, 1], [], []>} : vector<128x128xbf16>, vector<128x128xbf16>, vector<128x128xf32> -> vector<128x128xf32>
    %6 = arith.truncf %5 : vector<128x128xf32> to vector<128x128xbf16>
    %c0_4 = arith.constant 0 : index
    %c0_5 = arith.constant 0 : index
    %7 = vector.load %arg6[%c0_4, %c0_5] : memref<128x128xf32, #tpu.memory_space<vmem>>, vector<128x128xf32>
    %c0_6 = arith.constant 0 : index
    %c0_7 = arith.constant 0 : index
    %8 = vector.load %arg2[%c0_6, %c0_7] : memref<128x128xbf16, #tpu.memory_space<vmem>>, vector<128x128xbf16>
    %cst_8 = arith.constant dense<0.000000e+00> : vector<128x128xf32>
    %9 = tpu.matmul %8, %6, %cst_8 {dimension_numbers = #tpu.dot_dimension_numbers<[1], [0], [0], [1], [0, 0, 1, 1], [], []>} : vector<128x128xbf16>, vector<128x128xbf16>, vector<128x128xf32> -> vector<128x128xf32>
    %10 = arith.addf %7, %9 : vector<128x128xf32>
    %c0_9 = arith.constant 0 : index
    %c0_10 = arith.constant 0 : index
    %11 = vector.load %arg6[%c0_9, %c0_10] : memref<128x128xf32, #tpu.memory_space<vmem>>, vector<128x128xf32>
    tpu.vector_store %arg6[%c0_9, %c0_10], %10 {strides = array<i32>} : memref<128x128xf32, #tpu.memory_space<vmem>>, vector<128x128xf32>,
    %c0_i32_11 = arith.constant 0 : i32
    %12 = arith.cmpi eq, %arg1, %c0_i32_11 : i32
    %13 = arith.extui %12 : i1 to i32
    %c0_i32_12 = arith.constant 0 : i32
    %14 = arith.cmpi ne, %13, %c0_i32_12 : i32
    scf.if %14 {
      %c0_13 = arith.constant 0 : index
      %c0_14 = arith.constant 0 : index
      %15 = vector.load %arg6[%c0_13, %c0_14] : memref<128x128xf32, #tpu.memory_space<vmem>>, vector<128x128xf32>
      %c0_15 = arith.constant 0 : index
      %c0_16 = arith.constant 0 : index
      %16 = vector.load %arg5[%c0_15, %c0_16] : memref<1x128xf32, #tpu.memory_space<vmem>>, vector<1x128xf32>
      %17 = vector.broadcast %16 : vector<1x128xf32> to vector<128x128xf32>
      %18 = arith.addf %15, %17 : vector<128x128xf32>
      %c0_17 = arith.constant 0 : index
      %c0_18 = arith.constant 0 : index
      %19 = vector.load %arg6[%c0_17, %c0_18] : memref<128x128xf32, #tpu.memory_space<vmem>>, vector<128x128xf32>
      tpu.vector_store %arg6[%c0_17, %c0_18], %18 {strides = array<i32>} : memref<128x128xf32, #tpu.memory_space<vmem>>, vector<128x128xf32>,
    } else {
    }
    return
  }
  func.func @transform_0(%arg0: i32, %arg1: i32) -> (i32, i32) {
    %c0_i32 = arith.constant 0 : i32
    return %arg0, %arg1 : i32, i32
  }
  func.func @transform_1(%arg0: i32, %arg1: i32) -> (i32, i32) {
    %c0_i32 = arith.constant 0 : i32
    %c0_i32_0 = arith.constant 0 : i32
    return %arg1, %c0_i32 : i32, i32
  }
  func.func @transform_2(%arg0: i32, %arg1: i32) -> (i32, i32) {
    %c0_i32 = arith.constant 0 : i32
    %c0_i32_0 = arith.constant 0 : i32
    %c0_i32_1 = arith.constant 0 : i32
    return %c0_i32, %c0_i32_0 : i32, i32
  }
  func.func @transform_3(%arg0: i32, %arg1: i32) -> (i32, i32) {
    %c0_i32 = arith.constant 0 : i32
    %c0_i32_0 = arith.constant 0 : i32
    %c0_i32_1 = arith.constant 0 : i32
    return %c0_i32, %c0_i32_0 : i32, i32
  }
  func.func @transform_4(%arg0: i32, %arg1: i32) -> (i32, i32) {
    %c0_i32 = arith.constant 0 : i32
    %c0_i32_0 = arith.constant 0 : i32
    return %arg0, %c0_i32 : i32, i32
  }
}

</mosaic_0001>

<bundles_post_ra>
// kernel: tpu_custom_call.1
= control target key start
LH: loop header
LB: loop body
LE: loop exit
PB: predicated region body
PF: predicated region fallthrough
CT: control target
= control target key end

     0   :  { %9 = vsyncpa [#allocation3], 0  ;;  %s946_s0 = inlined_call_operand.hbm [shape: bf16[128,128], index: 0, kind: input, shape index: {}]   ;;  %s947_s1 = inlined_call_operand.hbm [shape: bf16[128,128], index: 1, kind: input, shape index: {}]   ;;  %s948_s2 = inlined_call_operand.hbm [shape: bf16[128,128], index: 2, kind: input, shape index: {}]   ;;  %s949_s3 = inlined_call_operand.vmem [shape: f32[1,128], index: 3, kind: input, shape index: {}]   ;;  %s950_s4 = inlined_call_operand.hbm [shape: f32[128,128], index: 4, kind: output, shape index: {}]  }
   0x1   :  { %10 = vsyncpa [#allocation6], 0 }
   0x2   :  { %11 = vsyncpa [#allocation4], 0  ;;  %s846_s15 = smov [#allocation5]   ;;  %s847_s17 = smov [#allocation2]  }
   0x3   :  { %s29_s16 = sshll.u32 %s846_s15, 4  ;;  %s17_s18 = sshll.u32 %s847_s17, 4  ;;  %s30_s16 = int_to_ptr.vmem [resolvable:$true] %s29_s16  ;;  %s879_s18 = int_to_ptr.vmem [resolvable:$true] %s17_s18 }
   0x4   :  { %s752_s21 = scalar_lea.hbm %s947_s1, 1024 }
   0x5   :  { %p753_p0 = scmp.ne.s32.totalorder %s947_s1, %s752_s21  ;;  %p756_p1 = scmp.lt.u32.totalorder %s752_s21, %s947_s1 }
   0x7   :  { %p758_p2 = pnand %p756_p1, %p753_p0 }
   0x9   :  { %761 = shalt.err (!%p758_p2)
}
   0xa   :  { %s762_s26 = scalar_lea.vmem %s30_s16, 1024  ;;  %p767_p4 = scmp.lt.s32.totalorder %s30_s16, %s30_s16 }
   0xb   :  { %p763_p3 = scmp.ne.s32.totalorder %s30_s16, %s762_s26  ;;  %p768_p5 = scmp.lt.s32.totalorder %s762_s26, %s762_s26 }
   0xd   :  { %p769_p6 = por %p768_p5, %p767_p4 }
   0xf   :  { %p770_p7 = pnand %p769_p6, %p763_p3 }
  0x11   :  { %773 = shalt.err (!%p770_p7)
}
  0x12   :  { %s848_s27 = smov 64   ;;  %s849_s28 = smov 4  }
  0x13   :  { %35 = dma.hbm_to_vmem [thread:$0]  %s947_s1, 1024, %s30_s16, [#allocation6], %s848_s27, %s848_s27, %s849_s28  }
  0x14   :  { %s774_s7 = scalar_lea.hbm %s946_s0, 1024 }
  0x15   :  { %p775_p8 = scmp.ne.s32.totalorder %s946_s0, %s774_s7  ;;  %p778_p9 = scmp.lt.u32.totalorder %s774_s7, %s946_s0 }
  0x17   :  { %p780_p10 = pnand %p778_p9, %p775_p8 }
  0x19   :  { %783 = shalt.err (!%p780_p10)
}
  0x1a   :  { %s784_s12 = scalar_lea.vmem %s879_s18, 1024  ;;  %p789_p12 = scmp.lt.s32.totalorder %s879_s18, %s879_s18 }
  0x1b   :  { %p785_p11 = scmp.ne.s32.totalorder %s879_s18, %s784_s12  ;;  %p790_p13 = scmp.lt.s32.totalorder %s784_s12, %s784_s12 }
  0x1d   :  { %p791_p0 = por %p790_p13, %p789_p12 }
  0x1f   :  { %p792_p1 = pnand %p791_p0, %p785_p11 }
  0x21   :  { %795 = shalt.err (!%p792_p1)
}
  0x22   :  { %23 = dma.hbm_to_vmem [thread:$0]  %s946_s0, 1024, %s879_s18, [#allocation3], %s848_s27, %s848_s27, %s849_s28  }
  0x23   :  { %s850_s14 = smov [#allocation7]   ;;  %s796_s19 = scalar_lea.hbm %s948_s2, 1024 }
  0x24   :  { %s41_s15 = sshll.u32 %s850_s14, 4  ;;  %p797_p2 = scmp.ne.s32.totalorder %s948_s2, %s796_s19  ;;  %s42_s15 = int_to_ptr.vmem [resolvable:$true] %s41_s15 }
  0x25   :  { %p800_p3 = scmp.lt.u32.totalorder %s796_s19, %s948_s2 }
  0x27   :  { %p802_p4 = pnand %p800_p3, %p797_p2 }
  0x29   :  { %805 = shalt.err (!%p802_p4)
}
  0x2a   :  { %s806_s24 = scalar_lea.vmem %s42_s15, 1024  ;;  %p811_p6 = scmp.lt.s32.totalorder %s42_s15, %s42_s15 }
  0x2b   :  { %p807_p5 = scmp.ne.s32.totalorder %s42_s15, %s806_s24  ;;  %p812_p7 = scmp.lt.s32.totalorder %s806_s24, %s806_s24 }
  0x2d   :  { %p813_p8 = por %p812_p7, %p811_p6 }
  0x2f   :  { %p814_p9 = pnand %p813_p8, %p807_p5 }
  0x31   :  { %817 = shalt.err (!%p814_p9)
}
  0x32   :  { %47 = dma.hbm_to_vmem [thread:$0]  %s948_s2, 1024, %s42_s15, [#allocation6], %s848_s27, %s848_s27, %s849_s28  }
  0x33   :  { %840 = dma.done.wait [#allocation3], 1024  }
  0x34   :  { %841 = vsyncadd [#allocation3], 4294966272 }
  0x35   :  { %842 = dma.done.wait [#allocation6], 2048  }
  0x36   :  { %843 = vsyncadd [#allocation6], 4294965248  ;;  %v728_v0 = vld [vmem:[#allocation7] sm:$0xff]   ;;  %v729_v1 = vld [vmem:[#allocation7 + $0x8] sm:$0xff]  }
  0x37   :  { %655 = vmatprep.subr.bf16.mxu0 %v728_v0  ;;  %v730_v2 = vld [vmem:[#allocation7 + $0x10] sm:$0xff]   ;;  %v731_v3 = vld [vmem:[#allocation7 + $0x18] sm:$0xff]   ;;  %v736_v4 = vld [vmem:[#allocation5] sm:$0xff]  }
  0x38   :  { %656 = vmatpush3.bf16.msra.mxu0 %v728_v0  ;;  %671 = vmatprep.mubr.bf16.mxu0 %v736_v4  ;;  %v732_v5 = vld [vmem:[#allocation7 + $0x20] sm:$0xff]   ;;  %v733_v6 = vld [vmem:[#allocation7 + $0x28] sm:$0xff]   ;;  %v734_v7 = vld [vmem:[#allocation7 + $0x30] sm:$0xff]  }
  0x39   :  { %657 = vmatprep.subr.bf16.mxu0 %v729_v1  ;;  %v735_v8 = vld [vmem:[#allocation7 + $0x38] sm:$0xff]   ;;  %v737_v9 = vld [vmem:[#allocation5 + $0x8] sm:$0xff]   ;;  %v738_v10 = vld [vmem:[#allocation5 + $0x10] sm:$0xff]  }
  0x3a   :  { %v739_v11 = vld [vmem:[#allocation5 + $0x18] sm:$0xff]   ;;  %v740_v12 = vld [vmem:[#allocation5 + $0x20] sm:$0xff]   ;;  %v741_v13 = vld [vmem:[#allocation5 + $0x28] sm:$0xff]  }
  0x3b   :  { %v742_v14 = vld [vmem:[#allocation5 + $0x30] sm:$0xff]   ;;  %v743_v15 = vld [vmem:[#allocation5 + $0x38] sm:$0xff]   ;;  %v744_v16 = vld [vmem:[#allocation2] sm:$0xff]  }
  0x3c   :  { %658 = vmatpush3.bf16.msra.mxu0 %v729_v1  ;;  %703 = vmatprep.mubr.bf16.mxu1 %v744_v16  ;;  %v745_v41 = vld [vmem:[#allocation2 + $0x8] sm:$0xff]   ;;  %v746_v42 = vld [vmem:[#allocation2 + $0x10] sm:$0xff]   ;;  %v747_v43 = vld [vmem:[#allocation2 + $0x18] sm:$0xff]  }
  0x3d   :  { %659 = vmatprep.subr.bf16.mxu0 %v730_v2  ;;  %v748_v44 = vld [vmem:[#allocation2 + $0x20] sm:$0xff]   ;;  %v749_v45 = vld [vmem:[#allocation2 + $0x28] sm:$0xff]   ;;  %v750_v46 = vld [vmem:[#allocation2 + $0x30] sm:$0xff]  }
  0x3e   :  { %v751_v47 = vld [vmem:[#allocation2 + $0x38] sm:$0xff]   ;;  %v622_v49 = vld [vmem:[%s949_s3] ss:$0 sm:$0xff]  ;;  %s851_s3 = smov [#allocation8]  }
  0x3f   :  { %s585_s26 = sshll.u32 %s851_s3, 4  ;;  %s586_s26 = int_to_ptr.vmem [resolvable:$true] %s585_s26 }
  0x40   :  { %660 = vmatpush3.bf16.msra.mxu0 %v730_v2  ;;  %s818_s27 = scalar_lea.vmem %s586_s26, 2048  ;;  %p823_p11 = scmp.lt.s32.totalorder %s586_s26, %s586_s26 }
  0x41   :  { %661 = vmatprep.subr.bf16.mxu0 %v731_v3  ;;  %p819_p10 = scmp.ne.s32.totalorder %s586_s26, %s818_s27  ;;  %p824_p12 = scmp.lt.s32.totalorder %s818_s27, %s818_s27 }
  0x43   :  { %p825_p13 = por %p824_p12, %p823_p11 }
  0x44   :  { %662 = vmatpush3.bf16.msra.mxu0 %v731_v3 }
  0x45   :  { %663 = vmatprep.subr.bf16.mxu0 %v732_v5  ;;  %p826_p0 = pnand %p825_p13, %p819_p10 }
  0x48   :  { %664 = vmatpush3.bf16.msra.mxu0 %v732_v5 }
  0x49   :  { %665 = vmatprep.subr.bf16.mxu0 %v733_v6 }
  0x4c   :  { %666 = vmatpush3.bf16.msra.mxu0 %v733_v6 }
  0x4d   :  { %667 = vmatprep.subr.bf16.mxu0 %v734_v7 }
  0x50   :  { %668 = vmatpush3.bf16.msra.mxu0 %v734_v7 }
  0x51   :  { %669 = vmatprep.subr.bf16.mxu0 %v735_v8 }
  0x54   :  { %670 = vmatpush3.bf16.msra.mxu0 %v735_v8 }
  0x57   :  { %672 = vmatmul.mubr.bf16.vlgmr.msra.gmra.mrb[0].mxu0 %v737_v9 }
  0x58   :  { %675 = vmatprep.mubr.bf16.mxu0 %v738_v10 }
  0x5f   :  { %676 = vmatmul.mubr.bf16.gmra.mrb[4].mxu0 %v739_v11 }
  0x60   :  { %679 = vmatprep.mubr.bf16.mxu0 %v740_v12 }
  0x67   :  { %680 = vmatmul.mubr.bf16.gmra.mrb[8].mxu0 %v741_v13 }
  0x68   :  { %683 = vmatprep.mubr.bf16.mxu0 %v742_v14 }
  0x6f   :  { %684 = vmatmul.mubr.bf16.gmra.mrb[12].mxu0 %v743_v15 }
 0x12a   :  { %v673_v17 = vpop.f32.mrb[0].mxu0 }
 0x12b   :  { %v242_v18 = vpop.f32.mrb[1].mxu0 }
 0x12c   :  { %v674_v19 = vpop.f32.mrb[2].mxu0 }
 0x12d   :  { %v306_v20 = vpack.c.bf16 %v674_v19, %v673_v17  ;;  %v245_v21 = vpop.f32.mrb[3].mxu0 }
 0x12e   :  { %v305_v22 = vpack.c.bf16 %v245_v21, %v242_v18 }
 0x130   :  { %687 = vmatprep.subr.bf16.mxu1 %v305_v22 }
 0x131   :  { %688 = vmatpush3.bf16.msra.mxu1 %v305_v22 }
 0x132   :  { %v677_v23 = vpop.f32.mrb[4].mxu0  ;;  %689 = vmatprep.subr.bf16.mxu1 %v306_v20 }
 0x133   :  { %v258_v24 = vpop.f32.mrb[5].mxu0 }
 0x134   :  { %v678_v25 = vpop.f32.mrb[6].mxu0 }
 0x135   :  { %v308_v26 = vpack.c.bf16 %v678_v25, %v677_v23  ;;  %v261_v27 = vpop.f32.mrb[7].mxu0  ;;  %690 = vmatpush3.bf16.msra.mxu1 %v306_v20 }
 0x136   :  { %v307_v28 = vpack.c.bf16 %v261_v27, %v258_v24 }
 0x138   :  { %691 = vmatprep.subr.bf16.mxu1 %v307_v28 }
 0x139   :  { %692 = vmatpush3.bf16.msra.mxu1 %v307_v28 }
 0x13a   :  { %v681_v29 = vpop.f32.mrb[8].mxu0  ;;  %693 = vmatprep.subr.bf16.mxu1 %v308_v26 }
 0x13b   :  { %v274_v30 = vpop.f32.mrb[9].mxu0 }
 0x13c   :  { %v682_v31 = vpop.f32.mrb[10].mxu0 }
 0x13d   :  { %v310_v32 = vpack.c.bf16 %v682_v31, %v681_v29  ;;  %v277_v33 = vpop.f32.mrb[11].mxu0  ;;  %694 = vmatpush3.bf16.msra.mxu1 %v308_v26 }
 0x13e   :  { %v309_v34 = vpack.c.bf16 %v277_v33, %v274_v30 }
 0x140   :  { %695 = vmatprep.subr.bf16.mxu1 %v309_v34 }
 0x141   :  { %696 = vmatpush3.bf16.msra.mxu1 %v309_v34 }
 0x142   :  { %v685_v35 = vpop.f32.mrb[12].mxu0  ;;  %697 = vmatprep.subr.bf16.mxu1 %v310_v32 }
 0x143   :  { %v290_v36 = vpop.f32.mrb[13].mxu0 }
 0x144   :  { %v686_v37 = vpop.f32.mrb[14].mxu0 }
 0x145   :  { %v312_v38 = vpack.c.bf16 %v686_v37, %v685_v35  ;;  %v293_v39 = vpop.f32.mrb[15].mxu0  ;;  %698 = vmatpush3.bf16.msra.mxu1 %v310_v32 }
 0x146   :  { %v311_v40 = vpack.c.bf16 %v293_v39, %v290_v36 }
 0x148   :  { %699 = vmatprep.subr.bf16.mxu1 %v311_v40 }
 0x149   :  { %700 = vmatpush3.bf16.msra.mxu1 %v311_v40 }
 0x14a   :  { %701 = vmatprep.subr.bf16.mxu1 %v312_v38 }
 0x14d   :  { %702 = vmatpush3.bf16.msra.mxu1 %v312_v38 }
 0x150   :  { %704 = vmatmul.mubr.bf16.vlgmr.msra.gmra.mrb[0].mxu1 %v745_v41 }
 0x151   :  { %707 = vmatprep.mubr.bf16.mxu1 %v746_v42 }
 0x158   :  { %708 = vmatmul.mubr.bf16.gmra.mrb[4].mxu1 %v747_v43 }
 0x159   :  { %711 = vmatprep.mubr.bf16.mxu1 %v748_v44 }
 0x160   :  { %712 = vmatmul.mubr.bf16.gmra.mrb[8].mxu1 %v749_v45 }
 0x161   :  { %715 = vmatprep.mubr.bf16.mxu1 %v750_v46 }
 0x168   :  { %716 = vmatmul.mubr.bf16.gmra.mrb[12].mxu1 %v751_v47 }
 0x223   :  { %v705_v48 = vpop.f32.mrb[0].mxu1 }
 0x224   :  { %v427_v50 = vpop.f32.mrb[1].mxu1  ;;  %v550_v52 = vadd.f32 %v705_v48, %v622_v49 }
 0x225   :  { %v706_v51 = vpop.f32.mrb[2].mxu1  ;;  %v548_v54 = vadd.f32 %v622_v49, %v427_v50 }
 0x226   :  { %v430_v53 = vpop.f32.mrb[3].mxu1  ;;  %566 = vst [vmem:[#allocation8 + $0x10] sm:$0xff] %v550_v52  ;;  %v551_v55 = vadd.f32 %v706_v51, %v622_v49 }
 0x227   :  { %564 = vst [vmem:[#allocation8] sm:$0xff] %v548_v54  ;;  %v549_v56 = vadd.f32 %v622_v49, %v430_v53 }
 0x228   :  { %567 = vst [vmem:[#allocation8 + $0x18] sm:$0xff] %v551_v55 }
 0x229   :  { %565 = vst [vmem:[#allocation8 + $0x8] sm:$0xff] %v549_v56 }
 0x22b   :  { %v709_v57 = vpop.f32.mrb[4].mxu1 }
 0x22c   :  { %v443_v58 = vpop.f32.mrb[5].mxu1  ;;  %v554_v60 = vadd.f32 %v709_v57, %v622_v49 }
 0x22d   :  { %v710_v59 = vpop.f32.mrb[6].mxu1  ;;  %v552_v62 = vadd.f32 %v622_v49, %v443_v58 }
 0x22e   :  { %v446_v61 = vpop.f32.mrb[7].mxu1  ;;  %570 = vst [vmem:[#allocation8 + $0x30] sm:$0xff] %v554_v60  ;;  %v555_v63 = vadd.f32 %v710_v59, %v622_v49 }
 0x22f   :  { %568 = vst [vmem:[#allocation8 + $0x20] sm:$0xff] %v552_v62  ;;  %v553_v0 = vadd.f32 %v622_v49, %v446_v61 }
 0x230   :  { %571 = vst [vmem:[#allocation8 + $0x38] sm:$0xff] %v555_v63 }
 0x231   :  { %569 = vst [vmem:[#allocation8 + $0x28] sm:$0xff] %v553_v0 }
 0x233   :  { %v713_v1 = vpop.f32.mrb[8].mxu1 }
 0x234   :  { %v459_v2 = vpop.f32.mrb[9].mxu1  ;;  %v558_v4 = vadd.f32 %v713_v1, %v622_v49 }
 0x235   :  { %v714_v3 = vpop.f32.mrb[10].mxu1  ;;  %v556_v6 = vadd.f32 %v622_v49, %v459_v2 }
 0x236   :  { %v462_v5 = vpop.f32.mrb[11].mxu1  ;;  %574 = vst [vmem:[#allocation8 + $0x50] sm:$0xff] %v558_v4  ;;  %v559_v7 = vadd.f32 %v714_v3, %v622_v49 }
 0x237   :  { %572 = vst [vmem:[#allocation8 + $0x40] sm:$0xff] %v556_v6  ;;  %v557_v8 = vadd.f32 %v622_v49, %v462_v5 }
 0x238   :  { %575 = vst [vmem:[#allocation8 + $0x58] sm:$0xff] %v559_v7 }
 0x239   :  { %573 = vst [vmem:[#allocation8 + $0x48] sm:$0xff] %v557_v8 }
 0x23b   :  { %v717_v9 = vpop.f32.mrb[12].mxu1 }
 0x23c   :  { %v475_v10 = vpop.f32.mrb[13].mxu1  ;;  %v562_v12 = vadd.f32 %v717_v9, %v622_v49 }
 0x23d   :  { %v718_v11 = vpop.f32.mrb[14].mxu1  ;;  %v560_v14 = vadd.f32 %v622_v49, %v475_v10 }
 0x23e   :  { %v478_v13 = vpop.f32.mrb[15].mxu1  ;;  %578 = vst [vmem:[#allocation8 + $0x70] sm:$0xff] %v562_v12  ;;  %v563_v15 = vadd.f32 %v718_v11, %v622_v49 }
 0x23f   :  { %576 = vst [vmem:[#allocation8 + $0x60] sm:$0xff] %v560_v14  ;;  %v561_v16 = vadd.f32 %v622_v49, %v478_v13 }
 0x240   :  { %579 = vst [vmem:[#allocation8 + $0x78] sm:$0xff] %v563_v15 }
 0x241   :  { %577 = vst [vmem:[#allocation8 + $0x68] sm:$0xff] %v561_v16 }
 0x242   :  { %829 = shalt.err (!%p826_p0)
}
 0x243   :  { %s830_s30 = scalar_lea.hbm %s950_s4, 2048 }
 0x244   :  { %p831_p1 = scmp.ne.s32.totalorder %s950_s4, %s830_s30  ;;  %p834_p2 = scmp.lt.u32.totalorder %s830_s30, %s950_s4 }
 0x246   :  { %p836_p3 = pnand %p834_p2, %p831_p1 }
 0x248   :  { %839 = shalt.err (!%p836_p3)
}
 0x249   :  { %s852_s9 = smov 128   ;;  %s853_s10 = smov 8  }
 0x24a   :  { %591 = dma.vmem_to_hbm [thread:$0]  %s586_s26, 2048, %s950_s4, [#allocation4], %s852_s9, %s852_s9, %s853_s10  }
 0x24b   :  { %844 = dma.done.wait [#allocation4], 2048  }
 0x24c   :  { %845 = vsyncadd [#allocation4], 4294965248 }
 0x24d   :  { %595 = vsyncpa [#allocation3], 1 }
 0x24e   :  { %596 = vsyncpa [#allocation6], 1 }
 0x24f   :  { %597 = vsyncpa [#allocation4], 1 }

</bundles_post_ra>
